<compile_context>
chip_gen: v7x
topology: tpu7x:2x2x1
jax: 0.10.0
libtpu: 0.0.40
codegen_flags: <defaults>
</compile_context>

<pallas_src>
import functools

import jax
import jax.numpy as jnp
from jax import lax
from jax.experimental import pallas as pl
from jax.experimental.pallas import tpu as pltpu

LANES = 128
SUBLANES = 8
DEFAULT_MAX_ROW_TILE = 4096       # rows per grid step: 2 MiB f32 per input tile
NUM_SPLITS = 2                    # v7x has 2 TensorCores; harmless on v5e/v6e
VMEM_LIMIT_BYTES = 32 * 1024 * 1024


def _combined_loss_kernel(pred_ref, target_ref, out_ref, *,
                          k1, k2, k3, k4, k5, delta,
                          row_tile, blocks_per_split, valid_rows):
    c = pl.program_id(0)          # split index (maps to a TensorCore on v7x)
    i = pl.program_id(1)          # block index within this split (reduction axis)

    # Output block (c, 0) is resident across the whole i axis -> use it as accumulator.
    @pl.when(i == 0)
    def _init():
        out_ref[...] = jnp.zeros_like(out_ref)

    p = pred_ref[...].astype(jnp.float32)
    t = target_ref[...].astype(jnp.float32)
    d = p - t
    ad = jnp.abs(d)
    sq = d * d
    # alpha*d^2 + (1-alpha)*0.5*(|d| + huber(d)) pre-folded into one select of two
    # affine forms (constants computed at trace time in the wrapper).
    fused = jnp.where(ad <= delta, k1 * sq + k2 * ad, k3 * sq + k4 * ad + k5)

    blk = c * blocks_per_split + i            # UN-clamped global block index
    row0 = blk * row_tile                     # first global row covered by this tile
    is_full = (row0 + row_tile) <= valid_rows

    # Fast path: tile fully inside the valid row range -> no masking work.
    @pl.when(is_full)
    def _acc_full():
        out_ref[...] += jnp.sum(fused.reshape(-1, SUBLANES, LANES), axis=0)

    # Edge tile (partial last block) or clamped ghost tile of split 1: zero the
    # rows past the valid range (their tile contents are unspecified / redundant).
    @pl.when(jnp.logical_not(is_full))
    def _acc_masked():
        row_ids = row0 + lax.broadcasted_iota(jnp.int32, fused.shape, 0)
        masked = jnp.where(row_ids < valid_rows, fused, 0.0)
        out_ref[...] += jnp.sum(masked.reshape(-1, SUBLANES, LANES), axis=0)


def combined_loss(pred, target, alpha=0.5, delta=1.0,
                  max_row_tile=DEFAULT_MAX_ROW_TILE):
    """Pallas-TPU equivalent of CombinedLoss.forward(pred, target) -> scalar."""
    assert pred.shape == target.shape, "pred/target must have identical shapes"
    n_elems = pred.size
    assert n_elems > 0

    # Min sublane granularity for the input dtype: f32 -> 8, bf16 -> 16, 8-bit -> 32.
    itemsize = min(jnp.dtype(pred.dtype).itemsize, jnp.dtype(target.dtype).itemsize)
    sub = max(SUBLANES, 32 // int(itemsize))
    assert max_row_tile % sub == 0, "max_row_tile must be a multiple of 32"

    rows = pl.cdiv(n_elems, LANES)
    padded_rows = pl.cdiv(rows, sub) * sub          # tiny pad only (< sub rows)
    padded_n = padded_rows * LANES

    # Single block (no pipeline overhead) for small inputs, capped tile otherwise.
    row_tile = padded_rows if padded_rows <= max_row_tile else max_row_tile

    def to_slab(x):
        flat = x.reshape(-1)
        if padded_n != n_elems:
            # Zero diff contributes 0 to every term; true element count used for mean.
            # TODO(synk): for very large ragged inputs avoid this copy with an
            #             element-granular tail mask instead of a row pad.
            flat = jnp.pad(flat, (0, padded_n - n_elems))
        return flat.reshape(padded_rows, LANES)

    pred2d = to_slab(pred)
    target2d = to_slab(target)

    total_blocks = pl.cdiv(padded_rows, row_tile)
    num_splits = min(NUM_SPLITS, total_blocks)
    blocks_per_split = pl.cdiv(total_blocks, num_splits)

    def in_map(c, i):
        # Clamp the (rare) ghost block of the second split so its DMA window stays
        # in bounds; the kernel masks its contribution to zero.
        return (jnp.minimum(c * blocks_per_split + i, total_blocks - 1), 0)

    a = float(alpha)
    dl = float(delta)
    kernel = functools.partial(
        _combined_loss_kernel,
        k1=a + 0.25 * (1.0 - a),                 # |d| <= delta branch
        k2=0.5 * (1.0 - a),
        k3=a,                                    # |d| >  delta branch
        k4=0.5 * (1.0 - a) * (1.0 + dl),
        k5=-0.25 * (1.0 - a) * dl * dl,
        delta=dl,
        row_tile=row_tile,
        blocks_per_split=blocks_per_split,
        valid_rows=padded_rows)

    partials = pl.pallas_call(
        kernel,
        out_shape=jax.ShapeDtypeStruct((num_splits * SUBLANES, LANES), jnp.float32),
        grid_spec=pltpu.PrefetchScalarGridSpec(
            num_scalar_prefetch=0,
            grid=(num_splits, blocks_per_split),
            in_specs=[
                pl.BlockSpec((row_tile, LANES), in_map),
                pl.BlockSpec((row_tile, LANES), in_map),
            ],
            out_specs=pl.BlockSpec((SUBLANES, LANES), lambda c, i: (c, 0)),
        ),
        compiler_params=pltpu.CompilerParams(
            dimension_semantics=("parallel", "arbitrary"),
            vmem_limit_bytes=VMEM_LIMIT_BYTES),
    )(pred2d, target2d)

    # Final cross-lane/split reduce of (num_splits*8, 128) partials + mean scaling.
    return jnp.sum(partials) * (1.0 / float(n_elems))


def _reference_loss(pred, target, alpha=0.5, delta=1.0):
    pred = pred.astype(jnp.float32)
    target = target.astype(jnp.float32)
    diff = pred - target
    ad = jnp.abs(diff)
    mse = jnp.mean(diff * diff)
    mae = jnp.mean(ad)
    hub = jnp.mean(jnp.where(ad <= delta, 0.5 * diff * diff, delta * (ad - 0.5 * delta)))
    return alpha * mse + (1 - alpha) * (0.5 * mae + 0.5 * hub)


if __name__ == "__main__":
    # CombinedLoss has no learnable parameters (alpha/delta are fixed scalars).
    key = jax.random.PRNGKey(0)
    kp, kt = jax.random.split(key)

    # Small regression-style batch: (batch=16, features=128) -> 2048 elements.
    pred = jax.random.normal(kp, (16, 128), dtype=jnp.float32) * 2.0
    target = jax.random.normal(kt, (16, 128), dtype=jnp.float32)
    ref = _reference_loss(pred, target, 0.5, 1.0)
    loss = jax.block_until_ready(combined_loss(pred, target, 0.5, 1.0))
    assert jnp.allclose(loss, ref, rtol=1e-5, atol=1e-5), (loss, ref)

    # Multi-block + 2-way split path (grid (2, 1)), even block count.
    loss_ms = jax.block_until_ready(
        combined_loss(pred, target, 0.5, 1.0, max_row_tile=8))
    assert jnp.allclose(loss_ms, ref, rtol=1e-5, atol=1e-5), (loss_ms, ref)

    # Odd block count -> clamped "ghost" block on split 1, fully masked in-kernel.
    pred3 = jax.random.normal(kp, (24, 128), dtype=jnp.float32)
    target3 = jax.random.normal(kt, (24, 128), dtype=jnp.float32)
    ref3 = _reference_loss(pred3, target3, 0.5, 1.0)
    loss3 = jax.block_until_ready(
        combined_loss(pred3, target3, 0.5, 1.0, max_row_tile=8))
    assert jnp.allclose(loss3, ref3, rtol=1e-5, atol=1e-5), (loss3, ref3)

    # Partial (masked) edge block: 40 rows with 16-row tiles -> blocks 16/16/8(+ghost).
    pred4 = jax.random.normal(kp, (40, 128), dtype=jnp.float32) * 3.0
    target4 = jax.random.normal(kt, (40, 128), dtype=jnp.float32)
    ref4 = _reference_loss(pred4, target4, 0.7, 1.5)
    loss4 = jax.block_until_ready(
        combined_loss(pred4, target4, 0.7, 1.5, max_row_tile=16))
    assert jnp.allclose(loss4, ref4, rtol=1e-5, atol=1e-5), (loss4, ref4)

    # Ragged shape (exercises the small zero-pad path), different alpha/delta.
    pred2 = jax.random.normal(kp, (3, 5, 7), dtype=jnp.float32)
    target2 = jax.random.normal(kt, (3, 5, 7), dtype=jnp.float32)
    ref2 = _reference_loss(pred2, target2, 0.3, 0.8)
    loss2 = jax.block_until_ready(combined_loss(pred2, target2, 0.3, 0.8))
    assert jnp.allclose(loss2, ref2, rtol=1e-5, atol=1e-5), (loss2, ref2)

    # bf16 inputs are streamed directly (no wrapper upcast); kernel computes in f32.
    pred_bf = pred.astype(jnp.bfloat16)
    target_bf = target.astype(jnp.bfloat16)
    ref_bf = _reference_loss(pred_bf, target_bf, 0.5, 1.0)
    loss_bf = jax.block_until_ready(combined_loss(pred_bf, target_bf, 0.5, 1.0))
    assert jnp.allclose(loss_bf, ref_bf, rtol=1e-5, atol=1e-5), (loss_bf, ref_bf)

    print("KERNEL_OK")
</pallas_src>

<mosaic_0001>
module attributes {stable_mosaic.version = 11 : i64} {
  func.func @_combined_loss_kernel(%arg0: i32, %arg1: i32, %arg2: memref<16x128xf32, #tpu.memory_space<vmem>>, %arg3: memref<16x128xf32, #tpu.memory_space<vmem>>, %arg4: memref<8x128xf32, #tpu.memory_space<vmem>>) attributes {dimension_semantics = [#tpu.dimension_semantics<parallel>, #tpu.dimension_semantics<arbitrary>], iteration_bounds = array<i64: 1, 1>, scalar_prefetch = 0 : i64, scratch_operands = 0 : i64, tpu.core_type = #tpu.core_type<tc>, window_params = [{transform_indices = @transform_0, window_bounds = array<i64: 16, 128>}, {transform_indices = @transform_1, window_bounds = array<i64: 16, 128>}, {transform_indices = @transform_2, window_bounds = array<i64: 8, 128>}]} {
    %c0_i32 = arith.constant 0 : i32
    %0 = arith.cmpi eq, %arg1, %c0_i32 : i32
    %1 = arith.extui %0 : i1 to i32
    %c0_i32_0 = arith.constant 0 : i32
    %2 = arith.cmpi ne, %1, %c0_i32_0 : i32
    scf.if %2 {
      %cst_13 = arith.constant 0.000000e+00 : f32
      %33 = vector.broadcast %cst_13 : f32 to vector<8x128xf32>
      %c0_14 = arith.constant 0 : index
      %c0_15 = arith.constant 0 : index
      %34 = vector.load %arg4[%c0_14, %c0_15] : memref<8x128xf32, #tpu.memory_space<vmem>>, vector<8x128xf32>
      tpu.vector_store %arg4[%c0_14, %c0_15], %33 {strides = array<i32>} : memref<8x128xf32, #tpu.memory_space<vmem>>, vector<8x128xf32>,
    } else {
    }
    %c0 = arith.constant 0 : index
    %c0_1 = arith.constant 0 : index
    %3 = vector.load %arg2[%c0, %c0_1] : memref<16x128xf32, #tpu.memory_space<vmem>>, vector<16x128xf32>
    %c0_2 = arith.constant 0 : index
    %c0_3 = arith.constant 0 : index
    %4 = vector.load %arg3[%c0_2, %c0_3] : memref<16x128xf32, #tpu.memory_space<vmem>>, vector<16x128xf32>
    %5 = arith.subf %3, %4 : vector<16x128xf32>
    %6 = math.absf %5 : vector<16x128xf32>
    %7 = arith.mulf %5, %5 : vector<16x128xf32>
    %cst = arith.constant 1.000000e+00 : f32
    %8 = vector.broadcast %cst : f32 to vector<16x128xf32>
    %9 = arith.cmpf ole, %6, %8 : vector<16x128xf32>
    %cst_4 = arith.constant 6.250000e-01 : f32
    %10 = vector.broadcast %cst_4 : f32 to vector<16x128xf32>
    %11 = arith.mulf %10, %7 : vector<16x128xf32>
    %cst_5 = arith.constant 2.500000e-01 : f32
    %12 = vector.broadcast %cst_5 : f32 to vector<16x128xf32>
    %13 = arith.mulf %12, %6 : vector<16x128xf32>
    %14 = arith.addf %11, %13 : vector<16x128xf32>
    %cst_6 = arith.constant 5.000000e-01 : f32
    %15 = vector.broadcast %cst_6 : f32 to vector<16x128xf32>
    %16 = arith.mulf %15, %7 : vector<16x128xf32>
    %cst_7 = arith.constant 5.000000e-01 : f32
    %17 = vector.broadcast %cst_7 : f32 to vector<16x128xf32>
    %18 = arith.mulf %17, %6 : vector<16x128xf32>
    %19 = arith.addf %16, %18 : vector<16x128xf32>
    %cst_8 = arith.constant -1.250000e-01 : f32
    %20 = vector.broadcast %cst_8 : f32 to vector<16x128xf32>
    %21 = arith.addf %19, %20 : vector<16x128xf32>
    %22 = arith.select %9, %14, %21 : vector<16x128xi1>, vector<16x128xf32>
    %c1_i32 = arith.constant 1 : i32
    %23 = arith.muli %arg0, %c1_i32 : i32
    %24 = arith.addi %23, %arg1 : i32
    %c16_i32 = arith.constant 16 : i32
    %25 = arith.muli %24, %c16_i32 : i32
    %c16_i32_9 = arith.constant 16 : i32
    %26 = arith.addi %25, %c16_i32_9 : i32
    %c16_i32_10 = arith.constant 16 : i32
    %27 = arith.cmpi sle, %26, %c16_i32_10 : i32
    %28 = arith.extui %27 : i1 to i32
    %c0_i32_11 = arith.constant 0 : i32
    %29 = arith.cmpi ne, %28, %c0_i32_11 : i32
    scf.if %29 {
      %c0_13 = arith.constant 0 : index
      %c0_14 = arith.constant 0 : index
      %33 = vector.load %arg4[%c0_13, %c0_14] : memref<8x128xf32, #tpu.memory_space<vmem>>, vector<8x128xf32>
      %34 = vector.shape_cast %22 : vector<16x128xf32> to vector<2x8x128xf32>
      %cst_15 = arith.constant dense<0.000000e+00> : vector<8x128xf32>
      %35 = vector.multi_reduction <add>, %34, %cst_15 [0] : vector<2x8x128xf32> to vector<8x128xf32>
      %36 = arith.addf %33, %35 : vector<8x128xf32>
      %c0_16 = arith.constant 0 : index
      %c0_17 = arith.constant 0 : index
      %37 = vector.load %arg4[%c0_16, %c0_17] : memref<8x128xf32, #tpu.memory_space<vmem>>, vector<8x128xf32>
      tpu.vector_store %arg4[%c0_16, %c0_17], %36 {strides = array<i32>} : memref<8x128xf32, #tpu.memory_space<vmem>>, vector<8x128xf32>,
    } else {
    }
    %true = arith.constant true
    %30 = arith.xori %27, %true : i1
    %31 = arith.extui %30 : i1 to i32
    %c0_i32_12 = arith.constant 0 : i32
    %32 = arith.cmpi ne, %31, %c0_i32_12 : i32
    scf.if %32 {
      %33 = tpu.iota {dimensions = array<i32: 0>} : vector<16x128xi32>
      %34 = vector.broadcast %25 : i32 to vector<16x128xi32>
      %35 = arith.addi %34, %33 : vector<16x128xi32>
      %c16_i32_13 = arith.constant 16 : i32
      %36 = vector.broadcast %c16_i32_13 : i32 to vector<16x128xi32>
      %37 = arith.cmpi slt, %35, %36 : vector<16x128xi32>
      %cst_14 = arith.constant 0.000000e+00 : f32
      %38 = vector.broadcast %cst_14 : f32 to vector<16x128xf32>
      %39 = arith.select %37, %22, %38 : vector<16x128xi1>, vector<16x128xf32>
      %c0_15 = arith.constant 0 : index
      %c0_16 = arith.constant 0 : index
      %40 = vector.load %arg4[%c0_15, %c0_16] : memref<8x128xf32, #tpu.memory_space<vmem>>, vector<8x128xf32>
      %41 = vector.shape_cast %39 : vector<16x128xf32> to vector<2x8x128xf32>
      %cst_17 = arith.constant dense<0.000000e+00> : vector<8x128xf32>
      %42 = vector.multi_reduction <add>, %41, %cst_17 [0] : vector<2x8x128xf32> to vector<8x128xf32>
      %43 = arith.addf %40, %42 : vector<8x128xf32>
      %c0_18 = arith.constant 0 : index
      %c0_19 = arith.constant 0 : index
      %44 = vector.load %arg4[%c0_18, %c0_19] : memref<8x128xf32, #tpu.memory_space<vmem>>, vector<8x128xf32>
      tpu.vector_store %arg4[%c0_18, %c0_19], %43 {strides = array<i32>} : memref<8x128xf32, #tpu.memory_space<vmem>>, vector<8x128xf32>,
    } else {
    }
    return
  }
  func.func @transform_0(%arg0: i32, %arg1: i32) -> (i32, i32) {
    %c1_i32 = arith.constant 1 : i32
    %0 = arith.muli %arg0, %c1_i32 : i32
    %1 = arith.addi %0, %arg1 : i32
    %c0_i32 = arith.constant 0 : i32
    %2 = arith.minsi %1, %c0_i32 : i32
    %c0_i32_0 = arith.constant 0 : i32
    %c0_i32_1 = arith.constant 0 : i32
    return %2, %c0_i32_0 : i32, i32
  }
  func.func @transform_1(%arg0: i32, %arg1: i32) -> (i32, i32) {
    %c1_i32 = arith.constant 1 : i32
    %0 = arith.muli %arg0, %c1_i32 : i32
    %1 = arith.addi %0, %arg1 : i32
    %c0_i32 = arith.constant 0 : i32
    %2 = arith.minsi %1, %c0_i32 : i32
    %c0_i32_0 = arith.constant 0 : i32
    %c0_i32_1 = arith.constant 0 : i32
    return %2, %c0_i32_0 : i32, i32
  }
  func.func @transform_2(%arg0: i32, %arg1: i32) -> (i32, i32) {
    %c0_i32 = arith.constant 0 : i32
    %c0_i32_0 = arith.constant 0 : i32
    return %arg0, %c0_i32 : i32, i32
  }
}

</mosaic_0001>

<bundles_post_ra>
// kernel: tpu_custom_call.1
= control target key start
LH: loop header
LB: loop body
LE: loop exit
PB: predicated region body
PF: predicated region fallthrough
CT: control target
= control target key end

     0   :  { %7 = vsyncpa [#allocation3], 0  ;;  %s276_s0 = inlined_call_operand.hbm [shape: f32[16,128], index: 0, kind: input, shape index: {}]   ;;  %s277_s1 = inlined_call_operand.hbm [shape: f32[16,128], index: 1, kind: input, shape index: {}]   ;;  %s278_s2 = inlined_call_operand.hbm [shape: f32[8,128], index: 2, kind: output, shape index: {}]  }
   0x1   :  { %8 = vsyncpa [#allocation6], 0 }
   0x2   :  { %9 = vsyncpa [#allocation4], 0  ;;  %s220_s9 = smov [#allocation2]   ;;  %s148_s13 = scalar_lea.hbm %s276_s0, 256 }
   0x3   :  { %s21_s10 = sshll.u32 %s220_s9, 4  ;;  %p149_p0 = scmp.ne.s32.totalorder %s276_s0, %s148_s13  ;;  %s22_s10 = int_to_ptr.vmem [resolvable:$true] %s21_s10 }
   0x4   :  { %p152_p1 = scmp.lt.u32.totalorder %s148_s13, %s276_s0 }
   0x6   :  { %p154_p2 = pnand %p152_p1, %p149_p0 }
   0x8   :  { %157 = shalt.err (!%p154_p2)
}
   0x9   :  { %s158_s18 = scalar_lea.vmem %s22_s10, 256  ;;  %p163_p4 = scmp.lt.s32.totalorder %s22_s10, %s22_s10 }
   0xa   :  { %p159_p3 = scmp.ne.s32.totalorder %s22_s10, %s158_s18  ;;  %p164_p5 = scmp.lt.s32.totalorder %s158_s18, %s158_s18 }
   0xc   :  { %p165_p6 = por %p164_p5, %p163_p4 }
   0xe   :  { %p166_p7 = pnand %p165_p6, %p159_p3 }
  0x10   :  { %169 = shalt.err (!%p166_p7)
}
  0x11   :  { %s221_s19 = smov 128   ;;  %s222_s20 = smov 8  }
  0x12   :  { %27 = dma.hbm_to_vmem [thread:$0]  %s276_s0, 256, %s22_s10, [#allocation3], %s221_s19, %s221_s19, %s222_s20  }
  0x13   :  { %s223_s23 = smov [#allocation5]   ;;  %s170_s27 = scalar_lea.hbm %s277_s1, 256 }
  0x14   :  { %s39_s24 = sshll.u32 %s223_s23, 4  ;;  %p171_p8 = scmp.ne.s32.totalorder %s277_s1, %s170_s27  ;;  %s40_s24 = int_to_ptr.vmem [resolvable:$true] %s39_s24 }
  0x15   :  { %p174_p9 = scmp.lt.u32.totalorder %s170_s27, %s277_s1 }
  0x17   :  { %p176_p10 = pnand %p174_p9, %p171_p8 }
  0x19   :  { %179 = shalt.err (!%p176_p10)
}
  0x1a   :  { %s180_s4 = scalar_lea.vmem %s40_s24, 256  ;;  %p185_p12 = scmp.lt.s32.totalorder %s40_s24, %s40_s24 }
  0x1b   :  { %p181_p11 = scmp.ne.s32.totalorder %s40_s24, %s180_s4  ;;  %p186_p13 = scmp.lt.s32.totalorder %s180_s4, %s180_s4 }
  0x1d   :  { %p187_p0 = por %p186_p13, %p185_p12 }
  0x1f   :  { %p188_p1 = pnand %p187_p0, %p181_p11 }
  0x21   :  { %191 = shalt.err (!%p188_p1)
}
  0x22   :  { %45 = dma.hbm_to_vmem [thread:$0]  %s277_s1, 256, %s40_s24, [#allocation6], %s221_s19, %s221_s19, %s222_s20  }
  0x23   :  { %214 = dma.done.wait [#allocation3], 256  }
  0x24   :  { %215 = vsyncadd [#allocation3], 4294967040 }
  0x25   :  { %216 = dma.done.wait [#allocation6], 256  }
  0x26   :  { %217 = vsyncadd [#allocation6], 4294967040  ;;  %v65_v0 = vld [vmem:[#allocation2] sm:$0xff]  ;;  %v66_v1 = vld [vmem:[#allocation2 + $0x8] sm:$0xff]  ;;  %s224_s1 = smov [#allocation7]  }
  0x27   :  { %v67_v2 = vld [vmem:[#allocation5] sm:$0xff]  ;;  %v68_v3 = vld [vmem:[#allocation5 + $0x8] sm:$0xff]  ;;  %s128_s6 = sshll.u32 %s224_s1, 4  ;;  %s129_s6 = int_to_ptr.vmem [resolvable:$true] %s128_s6 }
  0x28   :  { %v69_v4 = vsub.f32 %v65_v0, %v67_v2  ;;  %v70_v5 = vsub.f32 %v66_v1, %v68_v3  ;;  %s192_s7 = scalar_lea.vmem %s129_s6, 128  ;;  %p197_p3 = scmp.lt.s32.totalorder %s129_s6, %s129_s6 }
  0x29   :  { %p193_p2 = scmp.ne.s32.totalorder %s129_s6, %s192_s7  ;;  %p198_p4 = scmp.lt.s32.totalorder %s192_s7, %s192_s7 }
  0x2a   :  { %v71_v6 = vand.u32 2147483647, %v69_v4  ;;  %v73_v7 = vmul.f32 %v69_v4, %v69_v4  ;;  %v72_v8 = vand.u32 2147483647, %v70_v5  ;;  %v74_v9 = vmul.f32 %v70_v5, %v70_v5 }
  0x2b   :  { %p199_p5 = por %p198_p4, %p197_p3 }
  0x2c   :  { %v77_v10 = vmul.f32 0.625, %v73_v7  ;;  %v79_v11 = vmul.f32 0.25, %v71_v6  ;;  %v83_v12 = vmul.f32 0.5, %v73_v7  ;;  %v78_v13 = vmul.f32 0.625, %v74_v9 }
  0x2d   :  { %v80_v14 = vmul.f32 0.25, %v72_v8  ;;  %v84_v15 = vmul.f32 0.5, %v74_v9  ;;  %v85_v16 = vmul.f32 0.5, %v71_v6  ;;  %v86_v17 = vmul.f32 0.5, %v72_v8  ;;  %p200_p6 = pnand %p199_p5, %p193_p2 }
  0x2e   :  { %v81_v18 = vadd.f32 %v79_v11, %v77_v10  ;;  %vm75_vm0 = vcmp.le.f32.partialorder %v71_v6, 1.0  ;;  %vm76_vm1 = vcmp.le.f32.partialorder %v72_v8, 1.0 }
  0x2f   :  { %v82_v19 = vadd.f32 %v80_v14, %v78_v13  ;;  %v87_v20 = vadd.f32 %v85_v16, %v83_v12  ;;  %v88_v21 = vadd.f32 %v86_v17, %v84_v15 }
  0x31   :  { %v89_v22 = vadd.f32 -0.125, %v87_v20  ;;  %v90_v23 = vadd.f32 -0.125, %v88_v21 }
  0x33   :  { %v91_v24 = vsel %vm75_vm0, %v81_v18, %v89_v22  ;;  %v92_v25 = vsel %vm76_vm1, %v82_v19, %v90_v23 }
  0x34   :  { %v101_v26 = vadd.f32 %v92_v25, %v91_v24 }
  0x36   :  { %103 = vst [vmem:[#allocation7] sm:$0xff] %v101_v26 }
  0x37   :  { %203 = shalt.err (!%p200_p6)
}
  0x38   :  { %s204_s10 = scalar_lea.hbm %s278_s2, 128 }
  0x39   :  { %p205_p7 = scmp.ne.s32.totalorder %s278_s2, %s204_s10  ;;  %p208_p8 = scmp.lt.u32.totalorder %s204_s10, %s278_s2 }
  0x3b   :  { %p210_p9 = pnand %p208_p8, %p205_p7 }
  0x3d   :  { %213 = shalt.err (!%p210_p9)
}
  0x3e   :  { %131 = dma.vmem_to_hbm [thread:$0]  %s129_s6, 128, %s278_s2, [#allocation4]  }
  0x3f   :  { %218 = dma.done.wait [#allocation4], 128  }
  0x40   :  { %219 = vsyncadd [#allocation4], 4294967168 }
  0x41   :  { %135 = vsyncpa [#allocation3], 1 }
  0x42   :  { %136 = vsyncpa [#allocation6], 1 }
  0x43   :  { %137 = vsyncpa [#allocation4], 1 }

</bundles_post_ra>
